<compile_context>
chip_gen: v7x
topology: tpu7x:2x2x1
jax: 0.10.0
libtpu: 0.0.40
codegen_flags: <defaults>
</compile_context>

<pallas_src>
import math

import jax
import jax.numpy as jnp
import numpy as np
from jax.experimental import pallas as pl
from jax.experimental.pallas import tpu as pltpu

_BN_EPS = 1e-5
_MIB = 1024 * 1024


def _attn_pool_kernel(v_ref, q_ref, sel_ref, aff_ref, hsum_ref, hbias_ref, out_ref):
    """One grid step = TB whole batch elements (batch on sublanes, K on lanes).

    v_ref:     (C_v, TB, K) VMEM  v, channel-major
    q_ref:     (TB, K)      VMEM
    sel_ref:   (K, Lp)      VMEM  0/1 selector: sel[k, f*K+k'] = (k == k')
    aff_ref:   (2, Lp)      VMEM  row0 = repeat(gamma/sqrt(1+eps), K), row1 = repeat(beta, K)
    hsum_ref:  (1, 3)       SMEM  sum_x h_mat[0, c, x, 0]
    hbias_ref: (1, 3)       SMEM  h_bias[0, c, 0, 0]
    out_ref:   (TB, Lp)     VMEM  lane-dense output slab (f-major, k-minor)
    """
    v = v_ref[...].astype(jnp.float32)           # cast after DMA (inputs may be bf16)
    q = q_ref[...].astype(jnp.float32)           # (TB, K)

    # Per-batch scalars: plain lane reductions (no segmented/block-diag math).
    bsum = jnp.sum(q, axis=1, keepdims=True)                 # (TB, 1)  sum_k q
    vsum = jnp.sum(v, axis=0)                                # (TB, K)  sum_j v
    asum = jnp.sum(vsum, axis=1, keepdims=True)              # (TB, 1)  sum_{j,k} v
    s0 = jnp.sum(vsum * q, axis=1, keepdims=True)            # (TB, 1)  sum_{j,k} v*q

    row0 = jnp.zeros(q.shape, jnp.float32)       # sum_c att[c, j=0]
    row12 = jnp.zeros(q.shape, jnp.float32)      # sum_c (att[c, j=1] + att[c, j=2])
    for c in range(3):                           # static: h_mat's dim-1 is 3
        pre = v * (hsum_ref[0, c] * bsum)[None, :, :] + hbias_ref[0, c]  # (C_v,TB,K)
        # L2-normalize over the channel axis j (no eps clamp, like torch.norm;
        # an all-zero channel column yields NaN exactly as the module does).
        inv_nrm = 1.0 / jnp.sqrt(jnp.sum(pre * pre, axis=0, keepdims=True))
        x = pre * inv_nrm
        # Softmax over the channel axis; exact reciprocal (DMA-bound kernel).
        m = jnp.max(x, axis=0, keepdims=True)
        e = jnp.exp(x - m)
        att = e * pl.reciprocal(jnp.sum(e, axis=0, keepdims=True), approx=False)
        row0 = row0 + att[0]
        row12 = row12 + att[1] + att[2]

    seg = jnp.sum(row12 * q, axis=1, keepdims=True)          # (TB, 1) per-batch
    vals = row0 * s0 + asum * seg                            # (TB, K)

    # Expand (TB, K) -> (TB, F*K) lane-dense slab with an MXU matmul against a
    # 0/1 selector.  vals is hi/lo split so the result is ~f32-exact even if
    # the f32 matmul is lowered as a single bf16 MXU pass.
    vals_hi = vals.astype(jnp.bfloat16).astype(jnp.float32)
    vals_lo = vals - vals_hi
    sel = sel_ref[...]
    rep = (jnp.dot(vals_hi, sel, preferred_element_type=jnp.float32)
           + jnp.dot(vals_lo, sel, preferred_element_type=jnp.float32))  # (TB, Lp)

    # Eval-mode BatchNorm1d affine (1/sqrt(1+eps) folded into gamma).
    aff = aff_ref[...]
    out_ref[...] = (rep * aff[0:1, :] + aff[1:2, :]).astype(out_ref.dtype)


def _tpu_vmem_and_cores():
    """Best-effort query of per-core VMEM capacity and TensorCores per chip."""
    vmem_cap = 64 * _MIB
    try:
        info = pltpu.get_tpu_info()
        cap = int(getattr(info, "vmem_capacity_bytes", 0) or 0)
        if cap > 0:
            vmem_cap = cap
    except Exception:
        pass
    num_tc = 1
    try:
        kind = jax.devices()[0].device_kind.lower()
        if any(tag in kind for tag in ("v4", "v5p", "v7", "7x")):
            num_tc = 2
    except Exception:
        pass
    return vmem_cap, num_tc


def _choose_batch_tile(B, K, C_v, L_pad, budget_bytes, num_tc):
    """Pick TB = whole batches per grid step.  (8,128)-legality: TB % 8 == 0 or
    TB == B.  1-TC chips: largest fitting block (fewest ~0.35us grid steps);
    2-TC chips: prefer a step count divisible by the core count (balanced
    megacore sharding), still as large as fits the VMEM budget."""
    def pad8(x):
        return max(8, -(-x // 8) * 8)

    def fits(tb):
        sub = pad8(tb)
        out_b = 2 * tb * L_pad * 4                         # double-buffered out block
        v_b = 2 * C_v * sub * 128 * 4                      # v block (K lanes pad to 128)
        q_b = 2 * sub * 128 * 4
        const_b = 2 * (pad8(K) + 8) * L_pad * 4            # selector + affine rows
        tmp_b = (8 + 6 * C_v) * sub * 128 * 4 + 2 * sub * L_pad * 4  # live temporaries
        return out_b + v_b + q_b + const_b + tmp_b <= budget_bytes

    legal = [tb for tb in range(1, B + 1)
             if B % tb == 0 and (tb % 8 == 0 or tb == B)]
    fitting = [tb for tb in legal if fits(tb)]
    pool = fitting if fitting else [min(legal)]
    if num_tc >= 2:
        balanced = [tb for tb in pool
                    if (B // tb) >= num_tc and (B // tb) % num_tc == 0]
        if balanced:
            return max(balanced)
        multi = [tb for tb in pool if (B // tb) >= 2]
        if multi:
            return max(multi)
    return max(pool)


def attention_pooling_forward(q, v, h_mat, h_bias, gamma, beta):
    """q: (B, K), v: (B, C_v, K), h_mat: (1, 3, F, 1), h_bias: (1, 3, 1, 1),
    gamma/beta: (F,) BatchNorm1d affine.  Returns the module's (B, F, K) f32."""
    B, C_v, K = v.shape
    feat = h_mat.shape[2]
    assert q.shape == (B, K)
    assert C_v >= 3, "forward indexes att_maps channels 0..2"

    f32 = jnp.float32
    L = feat * K
    L_pad = -(-L // 128) * 128            # lane-dense output width (vst, not vst.msk)

    vmem_cap, num_tc = _tpu_vmem_and_cores()
    # v5e/v6e (128 MiB physical): ~64 MiB block budget; v7x (64 MiB): ~24 MiB.
    budget = 64 * _MIB if vmem_cap > 64 * _MIB else 24 * _MIB
    vmem_limit = 100 * _MIB if vmem_cap > 64 * _MIB else 32 * _MIB
    TB = _choose_batch_tile(B, K, C_v, L_pad, budget, num_tc)
    grid = (B // TB,)

    # ---- wrapper-side layout + tiny parameter precompute (XLA glue) ---------
    v_t = jnp.transpose(v, (1, 0, 2))                         # (C_v, B, K): small input
    hsum = jnp.sum(h_mat[0, :, :, 0].astype(f32), axis=1).reshape(1, 3)
    hbias = h_bias[0, :, 0, 0].astype(f32).reshape(1, 3)

    # 0/1 selector sel[k, f*K+k'] = delta(k, k'): one MXU matmul expands the
    # per-(batch, k) pooled value into the (TB, F*K) lane-dense output slab.
    eye = jnp.eye(K, dtype=f32)
    sel = jnp.broadcast_to(eye[:, None, :], (K, feat, K)).reshape(K, L)
    gscale = gamma.astype(f32) / math.sqrt(1.0 + _BN_EPS)     # eval-BN folded scale
    aff = jnp.stack([jnp.repeat(gscale, K), jnp.repeat(beta.astype(f32), K)])  # (2, L)
    if L_pad != L:
        sel = jnp.pad(sel, ((0, 0), (0, L_pad - L)))
        aff = jnp.pad(aff, ((0, 0), (0, L_pad - L)))

    out = pl.pallas_call(
        _attn_pool_kernel,
        out_shape=jax.ShapeDtypeStruct((B, L_pad), f32),
        grid=grid,
        in_specs=[
            pl.BlockSpec((C_v, TB, K), lambda i: (0, i, 0)),        # v
            pl.BlockSpec((TB, K), lambda i: (i, 0)),                # q
            pl.BlockSpec((K, L_pad), lambda i: (0, 0)),             # selector (constant)
            pl.BlockSpec((2, L_pad), lambda i: (0, 0)),             # gamma'/beta rows
            pl.BlockSpec(memory_space=pltpu.MemorySpace.SMEM),      # hsum
            pl.BlockSpec(memory_space=pltpu.MemorySpace.SMEM),      # hbias
        ],
        out_specs=pl.BlockSpec((TB, L_pad), lambda i: (i, 0)),
        compiler_params=pltpu.CompilerParams(
            dimension_semantics=("parallel",),
            vmem_limit_bytes=vmem_limit),
    )(v_t, q, sel, aff, hsum, hbias)

    if L_pad != L:                        # only when F*K is not a 128-multiple
        out = out[:, :L]
    return out.reshape(B, feat, K)        # free reshape: (B, F*K) -> (B, F, K)


def _reference(q, v, h_mat, h_bias, gamma, beta):
    """Pure-JAX mirror of the torch forward (eval-mode BN) for verification."""
    B, C_v, K = v.shape
    hsum = jnp.sum(h_mat[0, :, :, 0], axis=1)                     # (3,)
    bsum = jnp.sum(q, axis=1)                                     # (B,)
    pre = (v[:, None, :, :] * hsum[None, :, None, None]
           * bsum[:, None, None, None]
           + h_bias[0, :, 0, 0][None, :, None, None])             # (B,3,C_v,K)
    nrm = jnp.sqrt(jnp.sum(pre * pre, axis=2, keepdims=True))
    att = jax.nn.softmax(pre / nrm, axis=2)                       # (B,3,C_v,K)
    S0 = jnp.sum(v * q[:, None, :], axis=(1, 2))                  # (B,)
    Asum = jnp.sum(v, axis=(1, 2))                                # (B,)
    logits0 = jnp.sum(att[:, :, 0, :], axis=1) * S0[:, None]      # (B,K)
    s1 = Asum * jnp.sum(jnp.sum(att[:, :, 1, :], axis=1) * q, axis=1)
    s2 = Asum * jnp.sum(jnp.sum(att[:, :, 2, :], axis=1) * q, axis=1)
    vals = logits0 + s1[:, None] + s2[:, None]                    # (B,K)
    y = vals[:, None, :] / jnp.sqrt(1.0 + _BN_EPS)                # (B,1,K)
    return gamma[None, :, None] * y + beta[None, :, None]         # (B,F,K)


if __name__ == "__main__":
    key = jax.random.PRNGKey(0)
    B, C_v, K = 4, 4, 16
    feature_dim = 96                      # module default

    k1, k2, k3, k4, k5, k6 = jax.random.split(key, 6)
    q = jax.random.normal(k1, (B, K), jnp.float32)
    v = jax.random.normal(k2, (B, C_v, K), jnp.float32)
    h_mat = jax.random.normal(k3, (1, 3, feature_dim, 1), jnp.float32)   # .normal_()
    h_bias = jax.random.normal(k4, (1, 3, 1, 1), jnp.float32)            # .normal_()
    # BatchNorm1d affine (defaults are ones/zeros; perturbed so the per-feature
    # scale/shift plumbing of the lane-dense output expansion is exercised).
    gamma = 1.0 + 0.1 * jax.random.normal(k5, (feature_dim,), jnp.float32)
    beta = 0.1 * jax.random.normal(k6, (feature_dim,), jnp.float32)

    out = attention_pooling_forward(q, v, h_mat, h_bias, gamma, beta)
    out = jax.block_until_ready(out)
    assert out.shape == (B, feature_dim, K)

    ref = _reference(q, v, h_mat, h_bias, gamma, beta)
    # Exact softmax reciprocal + hi/lo-split selector matmul: typical agreement
    # is ~1e-5; tolerance keeps headroom for EUP transcendental differences
    # between the Mosaic and XLA lowerings (was 1e-2 with the approx reciprocal).
    np.testing.assert_allclose(np.asarray(out), np.asarray(ref),
                               rtol=1e-3, atol=1e-3)
    print("KERNEL_OK")
</pallas_src>

<mosaic_0001>
module attributes {stable_mosaic.version = 11 : i64} {
  func.func @_attn_pool_kernel(%arg0: i32, %arg1: memref<4x4x16xf32, #tpu.memory_space<vmem>>, %arg2: memref<4x16xf32, #tpu.memory_space<vmem>>, %arg3: memref<16x1536xf32, #tpu.memory_space<vmem>>, %arg4: memref<2x1536xf32, #tpu.memory_space<vmem>>, %arg5: memref<1x3xf32, #tpu.memory_space<smem>>, %arg6: memref<1x3xf32, #tpu.memory_space<smem>>, %arg7: memref<4x1536xf32, #tpu.memory_space<vmem>>) attributes {dimension_semantics = [#tpu.dimension_semantics<parallel>], iteration_bounds = array<i64: 1>, scalar_prefetch = 0 : i64, scratch_operands = 0 : i64, tpu.core_type = #tpu.core_type<tc>, window_params = [{transform_indices = @transform_0, window_bounds = array<i64: 4, 4, 16>}, {transform_indices = @transform_1, window_bounds = array<i64: 4, 16>}, {pipeline_mode = #tpu.pipeline_mode<synchronous>, transform_indices = @transform_2, window_bounds = array<i64: 16, 1536>}, {pipeline_mode = #tpu.pipeline_mode<synchronous>, transform_indices = @transform_3, window_bounds = array<i64: 2, 1536>}, {transform_indices = @transform_4, window_bounds = array<i64: 1, 3>}, {transform_indices = @transform_5, window_bounds = array<i64: 1, 3>}, {transform_indices = @transform_6, window_bounds = array<i64: 4, 1536>}]} {
    %c0 = arith.constant 0 : index
    %c0_0 = arith.constant 0 : index
    %c0_1 = arith.constant 0 : index
    %0 = vector.load %arg1[%c0, %c0_0, %c0_1] : memref<4x4x16xf32, #tpu.memory_space<vmem>>, vector<4x4x16xf32>
    %c0_2 = arith.constant 0 : index
    %c0_3 = arith.constant 0 : index
    %1 = vector.load %arg2[%c0_2, %c0_3] : memref<4x16xf32, #tpu.memory_space<vmem>>, vector<4x16xf32>
    %cst = arith.constant dense<0.000000e+00> : vector<4xf32>
    %2 = vector.multi_reduction <add>, %1, %cst [1] : vector<4x16xf32> to vector<4xf32>
    %3 = vector.shape_cast %2 : vector<4xf32> to vector<4x1xf32>
    %cst_4 = arith.constant dense<0.000000e+00> : vector<4x16xf32>
    %4 = vector.multi_reduction <add>, %0, %cst_4 [0] : vector<4x4x16xf32> to vector<4x16xf32>
    %cst_5 = arith.constant dense<0.000000e+00> : vector<4xf32>
    %5 = vector.multi_reduction <add>, %4, %cst_5 [1] : vector<4x16xf32> to vector<4xf32>
    %6 = vector.shape_cast %5 : vector<4xf32> to vector<4x1xf32>
    %7 = arith.mulf %4, %1 : vector<4x16xf32>
    %cst_6 = arith.constant dense<0.000000e+00> : vector<4xf32>
    %8 = vector.multi_reduction <add>, %7, %cst_6 [1] : vector<4x16xf32> to vector<4xf32>
    %9 = vector.shape_cast %8 : vector<4xf32> to vector<4x1xf32>
    %cst_7 = arith.constant 0.000000e+00 : f32
    %10 = vector.broadcast %cst_7 : f32 to vector<4x16xf32>
    %cst_8 = arith.constant 0.000000e+00 : f32
    %11 = vector.broadcast %cst_8 : f32 to vector<4x16xf32>
    %c0_9 = arith.constant 0 : index
    %c0_10 = arith.constant 0 : index
    %12 = memref.load %arg5[%c0_9, %c0_10] : memref<1x3xf32, #tpu.memory_space<smem>>
    %13 = vector.broadcast %12 : f32 to vector<4x1xf32>
    %14 = arith.mulf %13, %3 : vector<4x1xf32>
    %15 = vector.shape_cast %14 : vector<4x1xf32> to vector<1x4x1xf32>
    %16 = vector.broadcast %15 : vector<1x4x1xf32> to vector<4x4x16xf32>
    %17 = arith.mulf %0, %16 : vector<4x4x16xf32>
    %c0_11 = arith.constant 0 : index
    %c0_12 = arith.constant 0 : index
    %18 = memref.load %arg6[%c0_11, %c0_12] : memref<1x3xf32, #tpu.memory_space<smem>>
    %19 = vector.broadcast %18 : f32 to vector<4x4x16xf32>
    %20 = arith.addf %17, %19 : vector<4x4x16xf32>
    %21 = arith.mulf %20, %20 : vector<4x4x16xf32>
    %cst_13 = arith.constant dense<0.000000e+00> : vector<4x16xf32>
    %22 = vector.multi_reduction <add>, %21, %cst_13 [0] : vector<4x4x16xf32> to vector<4x16xf32>
    %23 = vector.shape_cast %22 : vector<4x16xf32> to vector<1x4x16xf32>
    %24 = math.sqrt %23 : vector<1x4x16xf32>
    %cst_14 = arith.constant 1.000000e+00 : f32
    %25 = vector.broadcast %cst_14 : f32 to vector<1x4x16xf32>
    %26 = arith.divf %25, %24 : vector<1x4x16xf32>
    %27 = vector.broadcast %26 : vector<1x4x16xf32> to vector<4x4x16xf32>
    %28 = arith.mulf %20, %27 : vector<4x4x16xf32>
    %cst_15 = arith.constant dense<0xFF800000> : vector<4x16xf32>
    %29 = vector.multi_reduction <maximumf>, %28, %cst_15 [0] : vector<4x4x16xf32> to vector<4x16xf32>
    %30 = vector.shape_cast %29 : vector<4x16xf32> to vector<1x4x16xf32>
    %31 = vector.broadcast %30 : vector<1x4x16xf32> to vector<4x4x16xf32>
    %32 = arith.subf %28, %31 : vector<4x4x16xf32>
    %33 = math.exp %32 : vector<4x4x16xf32>
    %cst_16 = arith.constant dense<0.000000e+00> : vector<4x16xf32>
    %34 = vector.multi_reduction <add>, %33, %cst_16 [0] : vector<4x4x16xf32> to vector<4x16xf32>
    %35 = vector.shape_cast %34 : vector<4x16xf32> to vector<1x4x16xf32>
    %36 = tpu.reciprocal %35 : vector<1x4x16xf32> -> vector<1x4x16xf32>
    %37 = vector.broadcast %36 : vector<1x4x16xf32> to vector<4x4x16xf32>
    %38 = arith.mulf %33, %37 : vector<4x4x16xf32>
    %39 = vector.extract_strided_slice %38 {offsets = [0, 0, 0], sizes = [1, 4, 16], strides = [1, 1, 1]} : vector<4x4x16xf32> to vector<1x4x16xf32>
    %40 = vector.shape_cast %39 : vector<1x4x16xf32> to vector<4x16xf32>
    %41 = arith.addf %10, %40 : vector<4x16xf32>
    %42 = vector.extract_strided_slice %38 {offsets = [1, 0, 0], sizes = [1, 4, 16], strides = [1, 1, 1]} : vector<4x4x16xf32> to vector<1x4x16xf32>
    %43 = vector.shape_cast %42 : vector<1x4x16xf32> to vector<4x16xf32>
    %44 = arith.addf %11, %43 : vector<4x16xf32>
    %45 = vector.extract_strided_slice %38 {offsets = [2, 0, 0], sizes = [1, 4, 16], strides = [1, 1, 1]} : vector<4x4x16xf32> to vector<1x4x16xf32>
    %46 = vector.shape_cast %45 : vector<1x4x16xf32> to vector<4x16xf32>
    %47 = arith.addf %44, %46 : vector<4x16xf32>
    %c0_17 = arith.constant 0 : index
    %c1 = arith.constant 1 : index
    %48 = memref.load %arg5[%c0_17, %c1] : memref<1x3xf32, #tpu.memory_space<smem>>
    %49 = vector.broadcast %48 : f32 to vector<4x1xf32>
    %50 = arith.mulf %49, %3 : vector<4x1xf32>
    %51 = vector.shape_cast %50 : vector<4x1xf32> to vector<1x4x1xf32>
    %52 = vector.broadcast %51 : vector<1x4x1xf32> to vector<4x4x16xf32>
    %53 = arith.mulf %0, %52 : vector<4x4x16xf32>
    %c0_18 = arith.constant 0 : index
    %c1_19 = arith.constant 1 : index
    %54 = memref.load %arg6[%c0_18, %c1_19] : memref<1x3xf32, #tpu.memory_space<smem>>
    %55 = vector.broadcast %54 : f32 to vector<4x4x16xf32>
    %56 = arith.addf %53, %55 : vector<4x4x16xf32>
    %57 = arith.mulf %56, %56 : vector<4x4x16xf32>
    %cst_20 = arith.constant dense<0.000000e+00> : vector<4x16xf32>
    %58 = vector.multi_reduction <add>, %57, %cst_20 [0] : vector<4x4x16xf32> to vector<4x16xf32>
    %59 = vector.shape_cast %58 : vector<4x16xf32> to vector<1x4x16xf32>
    %60 = math.sqrt %59 : vector<1x4x16xf32>
    %cst_21 = arith.constant 1.000000e+00 : f32
    %61 = vector.broadcast %cst_21 : f32 to vector<1x4x16xf32>
    %62 = arith.divf %61, %60 : vector<1x4x16xf32>
    %63 = vector.broadcast %62 : vector<1x4x16xf32> to vector<4x4x16xf32>
    %64 = arith.mulf %56, %63 : vector<4x4x16xf32>
    %cst_22 = arith.constant dense<0xFF800000> : vector<4x16xf32>
    %65 = vector.multi_reduction <maximumf>, %64, %cst_22 [0] : vector<4x4x16xf32> to vector<4x16xf32>
    %66 = vector.shape_cast %65 : vector<4x16xf32> to vector<1x4x16xf32>
    %67 = vector.broadcast %66 : vector<1x4x16xf32> to vector<4x4x16xf32>
    %68 = arith.subf %64, %67 : vector<4x4x16xf32>
    %69 = math.exp %68 : vector<4x4x16xf32>
    %cst_23 = arith.constant dense<0.000000e+00> : vector<4x16xf32>
    %70 = vector.multi_reduction <add>, %69, %cst_23 [0] : vector<4x4x16xf32> to vector<4x16xf32>
    %71 = vector.shape_cast %70 : vector<4x16xf32> to vector<1x4x16xf32>
    %72 = tpu.reciprocal %71 : vector<1x4x16xf32> -> vector<1x4x16xf32>
    %73 = vector.broadcast %72 : vector<1x4x16xf32> to vector<4x4x16xf32>
    %74 = arith.mulf %69, %73 : vector<4x4x16xf32>
    %75 = vector.extract_strided_slice %74 {offsets = [0, 0, 0], sizes = [1, 4, 16], strides = [1, 1, 1]} : vector<4x4x16xf32> to vector<1x4x16xf32>
    %76 = vector.shape_cast %75 : vector<1x4x16xf32> to vector<4x16xf32>
    %77 = arith.addf %41, %76 : vector<4x16xf32>
    %78 = vector.extract_strided_slice %74 {offsets = [1, 0, 0], sizes = [1, 4, 16], strides = [1, 1, 1]} : vector<4x4x16xf32> to vector<1x4x16xf32>
    %79 = vector.shape_cast %78 : vector<1x4x16xf32> to vector<4x16xf32>
    %80 = arith.addf %47, %79 : vector<4x16xf32>
    %81 = vector.extract_strided_slice %74 {offsets = [2, 0, 0], sizes = [1, 4, 16], strides = [1, 1, 1]} : vector<4x4x16xf32> to vector<1x4x16xf32>
    %82 = vector.shape_cast %81 : vector<1x4x16xf32> to vector<4x16xf32>
    %83 = arith.addf %80, %82 : vector<4x16xf32>
    %c0_24 = arith.constant 0 : index
    %c2 = arith.constant 2 : index
    %84 = memref.load %arg5[%c0_24, %c2] : memref<1x3xf32, #tpu.memory_space<smem>>
    %85 = vector.broadcast %84 : f32 to vector<4x1xf32>
    %86 = arith.mulf %85, %3 : vector<4x1xf32>
    %87 = vector.shape_cast %86 : vector<4x1xf32> to vector<1x4x1xf32>
    %88 = vector.broadcast %87 : vector<1x4x1xf32> to vector<4x4x16xf32>
    %89 = arith.mulf %0, %88 : vector<4x4x16xf32>
    %c0_25 = arith.constant 0 : index
    %c2_26 = arith.constant 2 : index
    %90 = memref.load %arg6[%c0_25, %c2_26] : memref<1x3xf32, #tpu.memory_space<smem>>
    %91 = vector.broadcast %90 : f32 to vector<4x4x16xf32>
    %92 = arith.addf %89, %91 : vector<4x4x16xf32>
    %93 = arith.mulf %92, %92 : vector<4x4x16xf32>
    %cst_27 = arith.constant dense<0.000000e+00> : vector<4x16xf32>
    %94 = vector.multi_reduction <add>, %93, %cst_27 [0] : vector<4x4x16xf32> to vector<4x16xf32>
    %95 = vector.shape_cast %94 : vector<4x16xf32> to vector<1x4x16xf32>
    %96 = math.sqrt %95 : vector<1x4x16xf32>
    %cst_28 = arith.constant 1.000000e+00 : f32
    %97 = vector.broadcast %cst_28 : f32 to vector<1x4x16xf32>
    %98 = arith.divf %97, %96 : vector<1x4x16xf32>
    %99 = vector.broadcast %98 : vector<1x4x16xf32> to vector<4x4x16xf32>
    %100 = arith.mulf %92, %99 : vector<4x4x16xf32>
    %cst_29 = arith.constant dense<0xFF800000> : vector<4x16xf32>
    %101 = vector.multi_reduction <maximumf>, %100, %cst_29 [0] : vector<4x4x16xf32> to vector<4x16xf32>
    %102 = vector.shape_cast %101 : vector<4x16xf32> to vector<1x4x16xf32>
    %103 = vector.broadcast %102 : vector<1x4x16xf32> to vector<4x4x16xf32>
    %104 = arith.subf %100, %103 : vector<4x4x16xf32>
    %105 = math.exp %104 : vector<4x4x16xf32>
    %cst_30 = arith.constant dense<0.000000e+00> : vector<4x16xf32>
    %106 = vector.multi_reduction <add>, %105, %cst_30 [0] : vector<4x4x16xf32> to vector<4x16xf32>
    %107 = vector.shape_cast %106 : vector<4x16xf32> to vector<1x4x16xf32>
    %108 = tpu.reciprocal %107 : vector<1x4x16xf32> -> vector<1x4x16xf32>
    %109 = vector.broadcast %108 : vector<1x4x16xf32> to vector<4x4x16xf32>
    %110 = arith.mulf %105, %109 : vector<4x4x16xf32>
    %111 = vector.extract_strided_slice %110 {offsets = [0, 0, 0], sizes = [1, 4, 16], strides = [1, 1, 1]} : vector<4x4x16xf32> to vector<1x4x16xf32>
    %112 = vector.shape_cast %111 : vector<1x4x16xf32> to vector<4x16xf32>
    %113 = arith.addf %77, %112 : vector<4x16xf32>
    %114 = vector.extract_strided_slice %110 {offsets = [1, 0, 0], sizes = [1, 4, 16], strides = [1, 1, 1]} : vector<4x4x16xf32> to vector<1x4x16xf32>
    %115 = vector.shape_cast %114 : vector<1x4x16xf32> to vector<4x16xf32>
    %116 = arith.addf %83, %115 : vector<4x16xf32>
    %117 = vector.extract_strided_slice %110 {offsets = [2, 0, 0], sizes = [1, 4, 16], strides = [1, 1, 1]} : vector<4x4x16xf32> to vector<1x4x16xf32>
    %118 = vector.shape_cast %117 : vector<1x4x16xf32> to vector<4x16xf32>
    %119 = arith.addf %116, %118 : vector<4x16xf32>
    %120 = arith.mulf %119, %1 : vector<4x16xf32>
    %cst_31 = arith.constant dense<0.000000e+00> : vector<4xf32>
    %121 = vector.multi_reduction <add>, %120, %cst_31 [1] : vector<4x16xf32> to vector<4xf32>
    %122 = vector.shape_cast %121 : vector<4xf32> to vector<4x1xf32>
    %123 = vector.broadcast %9 : vector<4x1xf32> to vector<4x16xf32>
    %124 = arith.mulf %113, %123 : vector<4x16xf32>
    %125 = arith.mulf %6, %122 : vector<4x1xf32>
    %126 = vector.broadcast %125 : vector<4x1xf32> to vector<4x16xf32>
    %127 = arith.addf %124, %126 : vector<4x16xf32>
    %128 = arith.truncf %127 : vector<4x16xf32> to vector<4x16xbf16>
    %129 = arith.extf %128 : vector<4x16xbf16> to vector<4x16xf32>
    %130 = arith.subf %127, %129 : vector<4x16xf32>
    %c0_32 = arith.constant 0 : index
    %c0_33 = arith.constant 0 : index
    %131 = vector.load %arg3[%c0_32, %c0_33] : memref<16x1536xf32, #tpu.memory_space<vmem>>, vector<16x1536xf32>
    %cst_34 = arith.constant dense<0.000000e+00> : vector<4x1536xf32>
    %132 = tpu.matmul %129, %131, %cst_34 {dimension_numbers = #tpu.dot_dimension_numbers<[1], [0], [0], [1], [0, 0, 1, 1], [], []>} : vector<4x16xf32>, vector<16x1536xf32>, vector<4x1536xf32> -> vector<4x1536xf32>
    %cst_35 = arith.constant dense<0.000000e+00> : vector<4x1536xf32>
    %133 = tpu.matmul %130, %131, %cst_35 {dimension_numbers = #tpu.dot_dimension_numbers<[1], [0], [0], [1], [0, 0, 1, 1], [], []>} : vector<4x16xf32>, vector<16x1536xf32>, vector<4x1536xf32> -> vector<4x1536xf32>
    %134 = arith.addf %132, %133 : vector<4x1536xf32>
    %c0_36 = arith.constant 0 : index
    %c0_37 = arith.constant 0 : index
    %135 = vector.load %arg4[%c0_36, %c0_37] : memref<2x1536xf32, #tpu.memory_space<vmem>>, vector<2x1536xf32>
    %136 = vector.extract_strided_slice %135 {offsets = [0, 0], sizes = [1, 1536], strides = [1, 1]} : vector<2x1536xf32> to vector<1x1536xf32>
    %137 = vector.broadcast %136 : vector<1x1536xf32> to vector<4x1536xf32>
    %138 = arith.mulf %134, %137 : vector<4x1536xf32>
    %139 = vector.extract_strided_slice %135 {offsets = [1, 0], sizes = [1, 1536], strides = [1, 1]} : vector<2x1536xf32> to vector<1x1536xf32>
    %140 = vector.broadcast %139 : vector<1x1536xf32> to vector<4x1536xf32>
    %141 = arith.addf %138, %140 : vector<4x1536xf32>
    %c0_38 = arith.constant 0 : index
    %c0_39 = arith.constant 0 : index
    %142 = vector.load %arg7[%c0_38, %c0_39] : memref<4x1536xf32, #tpu.memory_space<vmem>>, vector<4x1536xf32>
    tpu.vector_store %arg7[%c0_38, %c0_39], %141 {strides = array<i32>} : memref<4x1536xf32, #tpu.memory_space<vmem>>, vector<4x1536xf32>,
    return
  }
  func.func @transform_0(%arg0: i32) -> (i32, i32, i32) {
    %c0_i32 = arith.constant 0 : i32
    %c0_i32_0 = arith.constant 0 : i32
    %c0_i32_1 = arith.constant 0 : i32
    return %c0_i32, %arg0, %c0_i32_0 : i32, i32, i32
  }
  func.func @transform_1(%arg0: i32) -> (i32, i32) {
    %c0_i32 = arith.constant 0 : i32
    %c0_i32_0 = arith.constant 0 : i32
    return %arg0, %c0_i32 : i32, i32
  }
  func.func @transform_2(%arg0: i32) -> (i32, i32) {
    %c0_i32 = arith.constant 0 : i32
    %c0_i32_0 = arith.constant 0 : i32
    %c0_i32_1 = arith.constant 0 : i32
    return %c0_i32, %c0_i32_0 : i32, i32
  }
  func.func @transform_3(%arg0: i32) -> (i32, i32) {
    %c0_i32 = arith.constant 0 : i32
    %c0_i32_0 = arith.constant 0 : i32
    %c0_i32_1 = arith.constant 0 : i32
    return %c0_i32, %c0_i32_0 : i32, i32
  }
  func.func @transform_4(%arg0: i32) -> (i32, i32) {
    %c0_i32 = arith.constant 0 : i32
    %c0_i32_0 = arith.constant 0 : i32
    %c0_i32_1 = arith.constant 0 : i32
    return %c0_i32, %c0_i32_0 : i32, i32
  }
  func.func @transform_5(%arg0: i32) -> (i32, i32) {
    %c0_i32 = arith.constant 0 : i32
    %c0_i32_0 = arith.constant 0 : i32
    %c0_i32_1 = arith.constant 0 : i32
    return %c0_i32, %c0_i32_0 : i32, i32
  }
  func.func @transform_6(%arg0: i32) -> (i32, i32) {
    %c0_i32 = arith.constant 0 : i32
    %c0_i32_0 = arith.constant 0 : i32
    return %arg0, %c0_i32 : i32, i32
  }
}

</mosaic_0001>

<bundles_post_ra>
// kernel: tpu_custom_call.1
= control target key start
LH: loop header
LB: loop body
LE: loop exit
PB: predicated region body
PF: predicated region fallthrough
CT: control target
= control target key end

     0   :  { %11 = vsyncpa [#allocation3], 0  ;;  %s2137_s0 = inlined_call_operand.hbm [shape: f32[4,4,16], index: 0, kind: input, shape index: {}]   ;;  %s2138_s1 = inlined_call_operand.hbm [shape: f32[4,16], index: 1, kind: input, shape index: {}]   ;;  %s2139_s2 = inlined_call_operand.hbm [shape: f32[16,1536], index: 2, kind: input, shape index: {}]   ;;  %s2140_s3 = inlined_call_operand.hbm [shape: f32[2,1536], index: 3, kind: input, shape index: {}]   ;;  %s2141_s4 = inlined_call_operand.vmem [shape: f32[1,3], index: 4, kind: input, shape index: {}]   ;;  %s2142_s5 = inlined_call_operand.vmem [shape: f32[1,3], index: 5, kind: input, shape index: {}]   ;;  %s2143_s6 = inlined_call_operand.hbm [shape: f32[4,1536], index: 6, kind: output, shape index: {}]  }
   0x1   :  { %12 = vsyncpa [#allocation7], 0 }
   0x2   :  { %13 = vsyncpa [#allocation10], 0 }
   0x3   :  { %14 = vsyncpa [#allocation5], 0 }
   0x4   :  { %15 = vsyncpa [#allocation13], 0 }
   0x5   :  { %16 = vsyncpa [#allocation4], 0  ;;  %s1797_s21 = smov [#allocation6]   ;;  %s1798_s23 = smov [#allocation2]  }
   0x6   :  { %s35_s22 = sshll.u32 %s1797_s21, 4  ;;  %s22_s24 = sshll.u32 %s1798_s23, 4  ;;  %s36_s22 = int_to_ptr.vmem [resolvable:$true] %s35_s22  ;;  %s1844_s24 = int_to_ptr.vmem [resolvable:$true] %s22_s24 }
   0x7   :  { %s1651_s27 = scalar_lea.hbm %s2138_s1, 64 }
   0x8   :  { %p1652_p0 = scmp.ne.s32.totalorder %s2138_s1, %s1651_s27  ;;  %p1655_p1 = scmp.lt.u32.totalorder %s1651_s27, %s2138_s1 }
   0xa   :  { %p1657_p2 = pnand %p1655_p1, %p1652_p0 }
   0xc   :  { %1660 = shalt.err (!%p1657_p2)
}
   0xd   :  { %s1661_s8 = scalar_lea.vmem %s36_s22, 64  ;;  %p1666_p4 = scmp.lt.s32.totalorder %s36_s22, %s36_s22 }
   0xe   :  { %p1662_p3 = scmp.ne.s32.totalorder %s36_s22, %s1661_s8  ;;  %p1667_p5 = scmp.lt.s32.totalorder %s1661_s8, %s1661_s8 }
  0x10   :  { %p1668_p6 = por %p1667_p5, %p1666_p4 }
  0x12   :  { %p1669_p7 = pnand %p1668_p6, %p1662_p3 }
  0x14   :  { %1672 = shalt.err (!%p1669_p7)
}
  0x15   :  { %38 = dma.hbm_to_vmem [thread:$0]  %s2138_s1, 64, %s36_s22, [#allocation7]  }
  0x16   :  { %s1673_s13 = scalar_lea.hbm %s2137_s0, 256 }
  0x17   :  { %p1674_p8 = scmp.ne.s32.totalorder %s2137_s0, %s1673_s13  ;;  %p1677_p9 = scmp.lt.u32.totalorder %s1673_s13, %s2137_s0 }
  0x19   :  { %p1679_p10 = pnand %p1677_p9, %p1674_p8 }
  0x1b   :  { %1682 = shalt.err (!%p1679_p10)
}
  0x1c   :  { %s1683_s18 = scalar_lea.vmem %s1844_s24, 256  ;;  %p1688_p12 = scmp.lt.s32.totalorder %s1844_s24, %s1844_s24 }
  0x1d   :  { %p1684_p11 = scmp.ne.s32.totalorder %s1844_s24, %s1683_s18  ;;  %p1689_p13 = scmp.lt.s32.totalorder %s1683_s18, %s1683_s18 }
  0x1f   :  { %p1690_p0 = por %p1689_p13, %p1688_p12 }
  0x21   :  { %p1691_p1 = pnand %p1690_p0, %p1684_p11 }
  0x23   :  { %1694 = shalt.err (!%p1691_p1)
}
  0x24   :  { %s1799_s1 = smov 64   ;;  %s1800_s19 = smov 4  }
  0x25   :  { %28 = dma.hbm_to_vmem [thread:$0]  %s2137_s0, 256, %s1844_s24, [#allocation3], %s1799_s1, %s1799_s1, %s1800_s19  }
  0x26   :  { %s1801_s22 = smov [#allocation8]   ;;  %s1695_s27 = scalar_lea.hbm %s2139_s2, 3072 }
  0x27   :  { %s44_s23 = sshll.u32 %s1801_s22, 4  ;;  %p1696_p2 = scmp.ne.s32.totalorder %s2139_s2, %s1695_s27  ;;  %s45_s23 = int_to_ptr.vmem [resolvable:$true] %s44_s23 }
  0x28   :  { %p1699_p3 = scmp.lt.u32.totalorder %s1695_s27, %s2139_s2 }
  0x2a   :  { %p1701_p4 = pnand %p1699_p3, %p1696_p2 }
  0x2c   :  { %1704 = shalt.err (!%p1701_p4)
}
  0x2d   :  { %s1705_s8 = scalar_lea.vmem %s45_s23, 3072  ;;  %p1710_p6 = scmp.lt.s32.totalorder %s45_s23, %s45_s23 }
  0x2e   :  { %p1706_p5 = scmp.ne.s32.totalorder %s45_s23, %s1705_s8  ;;  %p1711_p7 = scmp.lt.s32.totalorder %s1705_s8, %s1705_s8 }
  0x30   :  { %p1712_p8 = por %p1711_p7, %p1710_p6 }
  0x32   :  { %p1713_p9 = pnand %p1712_p8, %p1706_p5 }
  0x34   :  { %1716 = shalt.err (!%p1713_p9)
}
  0x35   :  { %s1802_s0 = smov 1536   ;;  %s1803_s24 = smov 96  }
  0x36   :  { %50 = dma.hbm_to_vmem [thread:$0]  %s2139_s2, 3072, %s45_s23, [#allocation7], %s1802_s0, %s1802_s0, %s1803_s24  }
  0x37   :  { %s1804_s11 = smov [#allocation9]   ;;  %s67_s15 = sshll.u32 %s2141_s4, 4  ;;  %s68_s15 = int_to_ptr.vmem [resolvable:$true] %s67_s15 }
  0x38   :  { %s57_s12 = sshll.u32 %s1804_s11, 4  ;;  %s1717_s18 = scalar_lea.hbm %s2140_s3, 384  ;;  %s58_s12 = int_to_ptr.vmem [resolvable:$true] %s57_s12 }
  0x39   :  { %p1718_p10 = scmp.ne.s32.totalorder %s2140_s3, %s1717_s18  ;;  %p1721_p11 = scmp.lt.u32.totalorder %s1717_s18, %s2140_s3 }
  0x3b   :  { %p1723_p12 = pnand %p1721_p11, %p1718_p10 }
  0x3d   :  { %1726 = shalt.err (!%p1723_p12)
}
  0x3e   :  { %s1727_s2 = scalar_lea.vmem %s58_s12, 384  ;;  %p1732_p0 = scmp.lt.s32.totalorder %s58_s12, %s58_s12 }
  0x3f   :  { %p1728_p13 = scmp.ne.s32.totalorder %s58_s12, %s1727_s2  ;;  %p1733_p1 = scmp.lt.s32.totalorder %s1727_s2, %s1727_s2 }
  0x41   :  { %p1734_p2 = por %p1733_p1, %p1732_p0 }
  0x43   :  { %p1735_p3 = pnand %p1734_p2, %p1728_p13 }
  0x45   :  { %1738 = shalt.err (!%p1735_p3)
}
  0x46   :  { %60 = dma.hbm_to_vmem [thread:$0]  %s2140_s3, 384, %s58_s12, [#allocation10]  }
  0x47   :  { %s77_s26 = sshll.u32 %s2142_s5, 4  ;;  %s1739_s27 = scalar_lea.vmem %s68_s15, 16  ;;  %s78_s26 = int_to_ptr.vmem [resolvable:$true] %s77_s26 }
  0x48   :  { %p1740_p4 = scmp.ne.s32.totalorder %s68_s15, %s1739_s27  ;;  %p1744_p5 = scmp.lt.s32.totalorder %s68_s15, %s68_s15 }
  0x49   :  { %p1745_p6 = scmp.lt.s32.totalorder %s1739_s27, %s1739_s27 }
  0x4b   :  { %p1746_p7 = por %p1745_p6, %p1744_p5 }
  0x4d   :  { %p1747_p8 = pnand %p1746_p7, %p1740_p4 }
  0x4f   :  { %1750 = shalt.err (!%p1747_p8)
}
  0x50   :  { %s1805_s28 = smov [#allocation11]   ;;  %s1751_s29 = scalar_lea.vmem %s78_s26, 16 }
  0x51   :  { %70 = dma.vmem_to_smem %s68_s15, 16, %s1805_s28, [#allocation5]  }
  0x52   :  { %p1752_p9 = scmp.ne.s32.totalorder %s78_s26, %s1751_s29  ;;  %p1756_p10 = scmp.lt.s32.totalorder %s78_s26, %s78_s26 }
  0x53   :  { %p1757_p11 = scmp.lt.s32.totalorder %s1751_s29, %s1751_s29 }
  0x55   :  { %p1758_p12 = por %p1757_p11, %p1756_p10 }
  0x57   :  { %p1759_p13 = pnand %p1758_p12, %p1752_p9 }
  0x59   :  { %1762 = shalt.err (!%p1759_p13)
}
  0x5a   :  { %s1806_s3 = smov [#allocation12]  }
  0x5b   :  { %80 = dma.vmem_to_smem %s78_s26, 16, %s1806_s3, [#allocation13]  }
  0x5c   :  { %1785 = dma.done.wait [#allocation3], 256  }
  0x5d   :  { %1786 = vsyncadd [#allocation3], 4294967040 }
  0x5e   :  { %1787 = dma.done.wait [#allocation7], 3136  }
  0x5f   :  { %1788 = vsyncadd [#allocation7], 4294964160 }
  0x60   :  { %1789 = dma.done.wait [#allocation10], 384  }
  0x61   :  { %1790 = vsyncadd [#allocation10], 4294966912 }
  0x62   :  { %1791 = dma.done.wait [#allocation5], 16  }
  0x63   :  { %1792 = vsyncadd [#allocation5], 4294967280 }
  0x64   :  { %1793 = dma.done.wait [#allocation13], 16  }
  0x65   :  { %1794 = vsyncadd [#allocation13], 4294967280 }
  0x66   :  { %99 = sfence }
  0x67   :  { %v1905_v0 = vld [vmem:[#allocation6] sm:$0xf]  ;;  %vm105_vm0 = vcmask 125952   ;;  %v1907_v1 = vld [vmem:[#allocation2] sm:$0xf]  ;;  %s123_s5 = sld [smem:[#allocation11]] }
  0x68   :  { %v106_v2 = vsel %vm105_vm0, %v1905_v0, 0.0  ;;  %v1911_v3 = vld [vmem:[#allocation2 + $0x4] sm:$0xf]  ;;  %v1913_v4 = vld [vmem:[#allocation2 + $0x8] sm:$0xf]  ;;  %v109_v5 = vsel %vm105_vm0, %v1907_v1, 0.0 }
  0x69   :  { %107 = vadd.xlane.f32.xlu0 %v106_v2  ;;  %v1917_v6 = vld [vmem:[#allocation2 + $0xc] sm:$0xf]  ;;  %v110_v7 = vsel %vm105_vm0, %v1911_v3, 0.0  ;;  %v112_v8 = vsel %vm105_vm0, %v1913_v4, 0.0  ;;  %s1521_s30 = sld [smem:[#allocation11 + $0x1]]  ;;  %s130_s7 = sld [smem:[#allocation12]] }
  0x6a   :  { %v111_v9 = vadd.f32 %v110_v7, %v109_v5  ;;  %v114_v10 = vsel %vm105_vm0, %v1917_v6, 0.0  ;;  %s1522_s8 = sld [smem:[#allocation12 + $0x1]]  ;;  %s1523_s0 = sld [smem:[#allocation11 + $0x2]]  ;;  %vm367_vm7 = vcmask 130048  }
  0x6b   :  { %s1524_s24 = sld [smem:[#allocation12 + $0x2]]  ;;  %s1808_s9 = smov [#allocation14]  }
  0x6c   :  { %v113_v11 = vadd.f32 %v112_v8, %v111_v9  ;;  %s1508_s10 = sshll.u32 %s1808_s9, 4  ;;  %s1509_s10 = int_to_ptr.vmem [resolvable:$true] %s1508_s10 }
  0x6d   :  { %v124_v16 = vstv %s123_s5  ;;  %s1763_s11 = scalar_lea.vmem %s1509_s10, 768  ;;  %p1768_p1 = scmp.lt.s32.totalorder %s1509_s10, %s1509_s10 }
  0x6e   :  { %v115_v12 = vadd.f32 %v114_v10, %v113_v11  ;;  %p1764_p0 = scmp.ne.s32.totalorder %s1509_s10, %s1763_s11  ;;  %p1769_p2 = scmp.lt.s32.totalorder %s1763_s11, %s1763_s11 }
  0x6f   :  { %v194_v17 = vstv %s1521_s30  ;;  %v131_v21 = vstv %s130_s7 }
  0x70   :  { %v119_v13 = vmul.f32 %v115_v12, %v1905_v0  ;;  %v116_v15 = vsel %vm105_vm0, %v115_v12, 0.0  ;;  %v201_v22 = vstv %s1522_s8  ;;  %v264_v23 = vstv %s1523_s0  ;;  %p1770_p3 = por %p1769_p2, %p1768_p1 }
  0x71   :  { %117 = vadd.xlane.f32.xlu0 %v116_v15  ;;  %v271_v47 = vstv %s1524_s24 }
  0x72   :  { %v120_v14 = vsel %vm105_vm0, %v119_v13, 0.0  ;;  %p1771_p4 = pnand %p1770_p3, %p1764_p0 }
  0x73   :  { %121 = vadd.xlane.f32.xlu1 %v120_v14 }
  0xf6   :  { %v108_v18 = vpop.xlane.xlu0 %107 }
  0xf7   :  { %v125_v19 = vmul.f32 %v124_v16, %v108_v18  ;;  %v195_v20 = vmul.f32 %v194_v17, %v108_v18  ;;  %v265_v43 = vmul.f32 %v264_v23, %v108_v18 }
  0xf9   :  { %v126_v24 = vmul.f32 %v125_v19, %v1907_v1  ;;  %v127_v25 = vmul.f32 %v125_v19, %v1911_v3  ;;  %v128_v26 = vmul.f32 %v125_v19, %v1913_v4  ;;  %v129_v27 = vmul.f32 %v125_v19, %v1917_v6 }
  0xfa   :  { %v196_v28 = vmul.f32 %v195_v20, %v1907_v1  ;;  %v197_v29 = vmul.f32 %v195_v20, %v1911_v3  ;;  %v198_v30 = vmul.f32 %v195_v20, %v1913_v4  ;;  %v199_v31 = vmul.f32 %v195_v20, %v1917_v6 }
  0xfb   :  { %v1936_v32 = vadd.f32 %v131_v21, %v126_v24  ;;  %v1938_v33 = vadd.f32 %v131_v21, %v127_v25  ;;  %v1940_v34 = vadd.f32 %v131_v21, %v128_v26  ;;  %v1942_v35 = vadd.f32 %v131_v21, %v129_v27 }
  0xfc   :  { %v1944_v36 = vadd.f32 %v201_v22, %v196_v28  ;;  %v1946_v37 = vadd.f32 %v201_v22, %v197_v29  ;;  %v1948_v38 = vadd.f32 %v201_v22, %v198_v30  ;;  %v1950_v39 = vadd.f32 %v201_v22, %v199_v31 }
  0xfd   :  { %v136_v40 = vmul.f32 %v1936_v32, %v1936_v32  ;;  %v137_v41 = vmul.f32 %v1938_v33, %v1938_v33  ;;  %v138_v42 = vmul.f32 %v1940_v34, %v1940_v34  ;;  %v139_v48 = vmul.f32 %v1942_v35, %v1942_v35 }
  0xfe   :  { %v206_v44 = vmul.f32 %v1944_v36, %v1944_v36  ;;  %v207_v45 = vmul.f32 %v1946_v37, %v1946_v37  ;;  %v208_v46 = vmul.f32 %v1948_v38, %v1948_v38  ;;  %v209_v52 = vmul.f32 %v1950_v39, %v1950_v39 }
  0xff   :  { %v140_v49 = vsel %vm105_vm0, %v136_v40, 0.0  ;;  %v141_v50 = vsel %vm105_vm0, %v137_v41, 0.0  ;;  %v143_v55 = vsel %vm105_vm0, %v138_v42, 0.0  ;;  %v266_v57 = vmul.f32 %v265_v43, %v1907_v1 }
 0x100   :  { %v142_v51 = vadd.f32 %v141_v50, %v140_v49  ;;  %v210_v53 = vsel %vm105_vm0, %v206_v44, 0.0  ;;  %v211_v54 = vsel %vm105_vm0, %v207_v45, 0.0  ;;  %v267_v58 = vmul.f32 %v265_v43, %v1911_v3 }
 0x101   :  { %v212_v56 = vadd.f32 %v211_v54, %v210_v53  ;;  %v213_v60 = vsel %vm105_vm0, %v208_v46, 0.0  ;;  %v268_v61 = vmul.f32 %v265_v43, %v1913_v4  ;;  %v269_v62 = vmul.f32 %v265_v43, %v1917_v6 }
 0x102   :  { %v144_v59 = vadd.f32 %v143_v55, %v142_v51  ;;  %v145_v63 = vsel %vm105_vm0, %v139_v48, 0.0  ;;  %v1979_v5 = vadd.f32 %v271_v47, %v266_v57  ;;  %v1981_v7 = vadd.f32 %v271_v47, %v267_v58 }
 0x103   :  { %v214_v2 = vadd.f32 %v213_v60, %v212_v56  ;;  %v215_v9 = vsel %vm105_vm0, %v209_v52, 0.0  ;;  %v1984_v1 = vadd.f32 %v271_v47, %v268_v61  ;;  %v1986_v3 = vadd.f32 %v271_v47, %v269_v62 }
 0x104   :  { %v146_v8 = vadd.f32 %v145_v63, %v144_v59  ;;  %v276_v4 = vmul.f32 %v1979_v5, %v1979_v5  ;;  %v277_v6 = vmul.f32 %v1981_v7, %v1981_v7 }
 0x105   :  { %v216_v10 = vadd.f32 %v215_v9, %v214_v2  ;;  %v278_v11 = vmul.f32 %v1984_v1, %v1984_v1  ;;  %v279_v12 = vmul.f32 %v1986_v3, %v1986_v3 }
 0x106   :  { %1609 = vrsqrt.f32 %v146_v8  ;;  %v280_v13 = vsel %vm105_vm0, %v276_v4, 0.0  ;;  %v281_v14 = vsel %vm105_vm0, %v277_v6, 0.0  ;;  %vm149_vm1 = vcmp.eq.f32.partialorder %v146_v8, inf }
 0x107   :  { %1611 = vrsqrt.f32 %v216_v10  ;;  %v282_v15 = vadd.f32 %v281_v14, %v280_v13  ;;  %v283_v16 = vsel %vm105_vm0, %v278_v11, 0.0  ;;  %v285_v18 = vsel %vm105_vm0, %v279_v12, 0.0 }
 0x108   :  { %v152_v23 = vand.u32 2147483648, %v146_v8  ;;  %vm151_vm2 = vcmp.eq.f32.partialorder %v146_v8, 0.0  ;;  %vm219_vm3 = vcmp.eq.f32.partialorder %v216_v10, inf  ;;  %v222_v26 = vand.u32 2147483648, %v216_v10 }
 0x109   :  { %v284_v17 = vadd.f32 %v283_v16, %v282_v15  ;;  %vm221_vm4 = vcmp.eq.f32.partialorder %v216_v10, 0.0 }
 0x10b   :  { %v286_v19 = vadd.f32 %v285_v18, %v284_v17 }
 0x10d   :  { %1613 = vrsqrt.f32 %v286_v19  ;;  %vm289_vm5 = vcmp.eq.f32.partialorder %v286_v19, inf  ;;  %v292_v40 = vand.u32 2147483648, %v286_v19  ;;  %vm291_vm6 = vcmp.eq.f32.partialorder %v286_v19, 0.0 }
 0x110   :  { %v1610_v20 = vpop.eup %1609 }
 0x111   :  { %v1612_v21 = vpop.eup %1611  ;;  %v148_v22 = vmul.f32 %v1610_v20, %v146_v8 }
 0x112   :  { %v218_v24 = vmul.f32 %v1612_v21, %v216_v10 }
 0x113   :  { %v150_v25 = vsel %vm149_vm1, %v146_v8, %v148_v22 }
 0x114   :  { %v153_v27 = vsel %vm151_vm2, %v152_v23, %v150_v25  ;;  %v220_v28 = vsel %vm219_vm3, %v216_v10, %v218_v24 }
 0x115   :  { %1615 = vrcp.f32 %v153_v27  ;;  %v223_v29 = vsel %vm221_vm4, %v222_v26, %v220_v28 }
 0x116   :  { %1617 = vrcp.f32 %v223_v29 }
 0x117   :  { %v1614_v30 = vpop.eup %1613 }
 0x118   :  { %v288_v31 = vmul.f32 %v1614_v30, %v286_v19 }
 0x11a   :  { %v290_v41 = vsel %vm289_vm5, %v286_v19, %v288_v31 }
 0x11b   :  { %v293_v42 = vsel %vm291_vm6, %v292_v40, %v290_v41 }
 0x11c   :  { %1619 = vrcp.f32 %v293_v42 }
 0x11f   :  { %v1616_v43 = vpop.eup %1615 }
 0x120   :  { %v1618_v44 = vpop.eup %1617  ;;  %v156_v45 = vmul.f32 %v1616_v43, %v1936_v32  ;;  %v157_v46 = vmul.f32 %v1616_v43, %v1938_v33  ;;  %v158_v47 = vmul.f32 %v1616_v43, %v1940_v34  ;;  %v159_v48 = vmul.f32 %v1616_v43, %v1942_v35 }
 0x121   :  { %v226_v49 = vmul.f32 %v1618_v44, %v1944_v36  ;;  %v227_v50 = vmul.f32 %v1618_v44, %v1946_v37  ;;  %v228_v51 = vmul.f32 %v1618_v44, %v1948_v38  ;;  %v229_v52 = vmul.f32 %v1618_v44, %v1950_v39 }
 0x122   :  { %v160_v53 = vsel %vm105_vm0, %v156_v45, -inf  ;;  %v161_v54 = vsel %vm105_vm0, %v157_v46, -inf  ;;  %v162_v32 = vsel %vm105_vm0, %v158_v47, -inf  ;;  %v163_v33 = vsel %vm105_vm0, %v159_v48, -inf }
 0x123   :  { %v164_v55 = vmax.f32 %v160_v53, %v161_v54  ;;  %v165_v34 = vmax.f32 %v162_v32, %v163_v33  ;;  %v230_v35 = vsel %vm105_vm0, %v226_v49, -inf  ;;  %v231_v36 = vsel %vm105_vm0, %v227_v50, -inf }
 0x124   :  { %v232_v37 = vsel %vm105_vm0, %v228_v51, -inf  ;;  %v233_v38 = vsel %vm105_vm0, %v229_v52, -inf  ;;  %v234_v56 = vmax.f32 %v230_v35, %v231_v36 }
 0x125   :  { %v166_v39 = vmax.f32 %v164_v55, %v165_v34  ;;  %v235_v57 = vmax.f32 %v232_v37, %v233_v38 }
 0x126   :  { %v1620_v60 = vpop.eup %1619 }
 0x127   :  { %v168_v58 = vsub.f32 %v157_v46, %v166_v39  ;;  %v169_v59 = vsub.f32 %v158_v47, %v166_v39  ;;  %v236_v61 = vmax.f32 %v234_v56, %v235_v57  ;;  %v167_v62 = vsub.f32 %v156_v45, %v166_v39 }
 0x128   :  { %v296_v2 = vmul.f32 %v1620_v60, %v1979_v5  ;;  %v170_v8 = vsub.f32 %v159_v48, %v166_v39  ;;  %v297_v11 = vmul.f32 %v1620_v60, %v1981_v7  ;;  %v298_v12 = vmul.f32 %v1620_v60, %v1984_v1 }
 0x129   :  { %v173_v63 = vmul.f32 1.442695, %v168_v58  ;;  %v175_v9 = vmul.f32 1.442695, %v169_v59  ;;  %v238_v10 = vsub.f32 %v227_v50, %v236_v61  ;;  %v239_v4 = vsub.f32 %v228_v51, %v236_v61 }
 0x12a   :  { %v237_v6 = vsub.f32 %v226_v49, %v236_v61  ;;  %v299_v13 = vmul.f32 %v1620_v60, %v1986_v3  ;;  %v240_v14 = vsub.f32 %v229_v52, %v236_v61  ;;  %v300_v17 = vsel %vm105_vm0, %v296_v2, -inf }
 0x12b   :  { %v243_v15 = vmul.f32 1.442695, %v238_v10  ;;  %v245_v16 = vmul.f32 1.442695, %v239_v4  ;;  %1621 = vpow2.f32 %v173_v63  ;;  %v301_v18 = vsel %vm105_vm0, %v297_v11, -inf }
 0x12c   :  { %v302_v5 = vsel %vm105_vm0, %v298_v12, -inf  ;;  %v303_v19 = vsel %vm105_vm0, %v299_v13, -inf  ;;  %v304_v20 = vmax.f32 %v300_v17, %v301_v18  ;;  %v171_v21 = vmul.f32 1.442695, %v167_v62 }
 0x12d   :  { %1623 = vpow2.f32 %v243_v15  ;;  %v177_v7 = vmul.f32 1.442695, %v170_v8  ;;  %v305_v1 = vmax.f32 %v302_v5, %v303_v19  ;;  %v241_v22 = vmul.f32 1.442695, %v237_v6 }
 0x12e   :  { %1625 = vpow2.f32 %v175_v9  ;;  %v247_v3 = vmul.f32 1.442695, %v240_v14 }
 0x12f   :  { %1627 = vpow2.f32 %v245_v16  ;;  %v306_v23 = vmax.f32 %v304_v20, %v305_v1 }
 0x130   :  { %1629 = vpow2.f32 %v171_v21 }
 0x131   :  { %1631 = vpow2.f32 %v241_v22  ;;  %v308_v24 = vsub.f32 %v297_v11, %v306_v23  ;;  %v309_v25 = vsub.f32 %v298_v12, %v306_v23  ;;  %v307_v26 = vsub.f32 %v296_v2, %v306_v23 }
 0x132   :  { %1633 = vpow2.f32 %v177_v7  ;;  %v310_v27 = vsub.f32 %v299_v13, %v306_v23  ;;  %v344_v23 = vld [vmem:[#allocation8 + $0x8] sm:$0xff] }
 0x133   :  { %1635 = vpow2.f32 %v247_v3  ;;  %v313_v28 = vmul.f32 1.442695, %v308_v24  ;;  %v315_v29 = vmul.f32 1.442695, %v309_v25  ;;  %v311_v30 = vmul.f32 1.442695, %v307_v26 }
 0x134   :  { %v317_v41 = vmul.f32 1.442695, %v310_v27  ;;  %v356_v24 = vld [vmem:[#allocation8 + $0x68] sm:$0xff]  ;;  %v346_v25 = vld [vmem:[#allocation8 + $0x18] sm:$0xff] }
 0x135   :  { %v1622_v31 = vpop.eup %1621  ;;  %1637 = vpow2.f32 %v313_v28  ;;  %v2038_v26 = vpack.c.bf16 %v356_v24, %v344_v23  ;;  %v358_v27 = vld [vmem:[#allocation8 + $0x78] sm:$0xff]  ;;  %v343_v28 = vld [vmem:[#allocation8] sm:$0xff] }
 0x136   :  { %1639 = vpow2.f32 %v315_v29  ;;  %v180_v44 = vsel %vm105_vm0, %v1622_v31, 0.0  ;;  %v355_v29 = vld [vmem:[#allocation8 + $0x60] sm:$0xff] }
 0x137   :  { %v1624_v40 = vpop.eup %1623  ;;  %1641 = vpow2.f32 %v311_v30  ;;  %v1807_v30 = vmov 0.0   ;;  %1538 = vmatprep.subr.bf16.mxu0 %v2038_v26 }
 0x138   :  { %v1626_v42 = vpop.eup %1625  ;;  %v250_v46 = vsel %vm105_vm0, %v1624_v40, 0.0  ;;  %1643 = vpow2.f32 %v317_v41  ;;  %435 = vmatprep.mubr.f32.mxu0 %v1807_v30  ;;  %506 = vmatprep.mubr.f32.mxu1 %v1807_v30  ;;  %v345_v41 = vld [vmem:[#allocation8 + $0x10] sm:$0xff] }
 0x139   :  { %v1628_v43 = vpop.eup %1627  ;;  %v182_v53 = vsel %vm105_vm0, %v1626_v42, 0.0 }
 0x13a   :  { %v1630_v45 = vpop.eup %1629  ;;  %v252_v32 = vsel %vm105_vm0, %v1628_v43, 0.0 }
 0x13b   :  { %v1632_v47 = vpop.eup %1631  ;;  %v179_v48 = vsel %vm105_vm0, %v1630_v45, 0.0 }
 0x13c   :  { %v1634_v49 = vpop.eup %1633  ;;  %v181_v50 = vadd.f32 %v180_v44, %v179_v48  ;;  %v249_v51 = vsel %vm105_vm0, %v1632_v47, 0.0  ;;  %v360_v44 = vld [vmem:[#allocation8 + $0x88] sm:$0xff] }
 0x13d   :  { %v1636_v52 = vpop.eup %1635  ;;  %v251_v54 = vadd.f32 %v250_v46, %v249_v51  ;;  %v184_v55 = vsel %vm105_vm0, %v1634_v49, 0.0  ;;  %v362_v46 = vld [vmem:[#allocation8 + $0x98] sm:$0xff]  ;;  %v122_v49 = vpop.xlane.xlu1 %121 }
 0x13e   :  { %v183_v33 = vadd.f32 %v182_v53, %v181_v50  ;;  %v254_v36 = vsel %vm105_vm0, %v1636_v52, 0.0  ;;  %v118_v50 = vpop.xlane.xlu0 %117 }
 0x13f   :  { %v253_v34 = vadd.f32 %v252_v32, %v251_v54  ;;  %v1638_v35 = vpop.eup %1637  ;;  %v347_v32 = vld [vmem:[#allocation8 + $0x20] sm:$0xff] }
 0x140   :  { %v185_v37 = vadd.f32 %v184_v55, %v183_v33  ;;  %v1640_v56 = vpop.eup %1639  ;;  %v320_v39 = vsel %vm105_vm0, %v1638_v35, 0.0  ;;  %v359_v55 = vld [vmem:[#allocation8 + $0x80] sm:$0xff] }
 0x141   :  { %v255_v38 = vadd.f32 %v254_v36, %v253_v34  ;;  %v1642_v57 = vpop.eup %1641  ;;  %v322_v61 = vsel %vm105_vm0, %v1640_v56, 0.0  ;;  %v349_v34 = vld [vmem:[#allocation8 + $0x30] sm:$0xff]  ;;  %v352_v36 = vld [vmem:[#allocation8 + $0x48] sm:$0xff] }
 0x142   :  { %1645 = vrcp.f32 %v185_v37  ;;  %v319_v58 = vsel %vm105_vm0, %v1642_v57, 0.0  ;;  %v1644_v59 = vpop.eup %1643 }
 0x143   :  { %1647 = vrcp.f32 %v255_v38  ;;  %v321_v60 = vadd.f32 %v320_v39, %v319_v58  ;;  %v324_v63 = vsel %vm105_vm0, %v1644_v59, 0.0  ;;  %v364_v38 = vld [vmem:[#allocation8 + $0xa8] sm:$0xff]  ;;  %v366_v39 = vld [vmem:[#allocation8 + $0xb8] sm:$0xff]  ;;  %v351_v59 = vld [vmem:[#allocation8 + $0x40] sm:$0xff] }
 0x145   :  { %v323_v62 = vadd.f32 %v322_v61, %v321_v60  ;;  %v363_v61 = vld [vmem:[#allocation8 + $0xa0] sm:$0xff] }
 0x147   :  { %v325_v2 = vadd.f32 %v324_v63, %v323_v62  ;;  %v353_v62 = vld [vmem:[#allocation8 + $0x50] sm:$0xff] }
 0x148   :  { %v365_v63 = vld [vmem:[#allocation8 + $0xb0] sm:$0xff] }
 0x149   :  { %1649 = vrcp.f32 %v325_v2  ;;  %v1553_v2 = vpack.c.bf16 %v364_v38, %v352_v36 }
 0x14c   :  { %v1646_v8 = vpop.eup %1645 }
 0x14d   :  { %v1648_v9 = vpop.eup %1647  ;;  %v187_v10 = vmul.f32 %v1646_v8, %v1630_v45  ;;  %v188_v4 = vmul.f32 %v1646_v8, %v1622_v31  ;;  %v189_v6 = vmul.f32 %v1646_v8, %v1626_v42  ;;  %v1541_v31 = vpack.c.bf16 %v358_v27, %v346_v25  ;;  %v348_v42 = vld [vmem:[#allocation8 + $0x28] sm:$0xff]  ;;  %v350_v45 = vld [vmem:[#allocation8 + $0x38] sm:$0xff] }
 0x14e   :  { %v257_v11 = vmul.f32 %v1648_v9, %v1632_v47  ;;  %v258_v13 = vmul.f32 %v1648_v9, %v1624_v40  ;;  %v259_v16 = vmul.f32 %v1648_v9, %v1628_v43  ;;  %v1539_v40 = vpack.c.bf16 %v355_v29, %v343_v28 }
 0x14f   :  { %v192_v12 = vadd.f32 %v189_v6, %v188_v4  ;;  %1542 = vmatprep.subr.bf16.mxu1 %v1541_v31  ;;  %v1545_v47 = vpack.c.bf16 %v360_v44, %v348_v42  ;;  %v1549_v48 = vpack.c.bf16 %v362_v46, %v350_v45  ;;  %v1555_v9 = vpack.c.bf16 %v363_v61, %v351_v59  ;;  %v1228_v42 = vld [vmem:[#allocation9 + $0x10] sm:$0xff] }
 0x150   :  { %v260_v14 = vadd.f32 %v257_v11, %v187_v10  ;;  %1540 = vmatpush1.bf16.msra.mxu0 %v1539_v40  ;;  %v1559_v10 = vpack.c.bf16 %v365_v63, %v353_v62  ;;  %v1232_v4 = vlaneseq }
 0x151   :  { %v261_v15 = vadd.f32 %v258_v13, %v192_v12  ;;  %1546 = vmatprep.subr.bf16.mxu0 %v1545_v47  ;;  %v1226_v13 = vld [vmem:[#allocation9] sm:$0xff] }
 0x152   :  { %v1233_v6 = vshrl.u32 %v1232_v4, 7 }
 0x153   :  { %v262_v17 = vadd.f32 %v261_v15, %v259_v16  ;;  %v1650_v18 = vpop.eup %1649 }
 0x154   :  { %v327_v5 = vmul.f32 %v1650_v18, %v1642_v57  ;;  %v328_v19 = vmul.f32 %v1650_v18, %v1638_v35  ;;  %v329_v21 = vmul.f32 %v1650_v18, %v1640_v56  ;;  %v361_v35 = vld [vmem:[#allocation8 + $0x90] sm:$0xff]  ;;  %v354_v56 = vld [vmem:[#allocation8 + $0x58] sm:$0xff]  ;;  %v1547_v57 = vpack.c.bf16 %v359_v55, %v347_v32 }
 0x155   :  { %v1551_v58 = vpack.c.bf16 %v361_v35, %v349_v34  ;;  %v1557_v8 = vpack.c.bf16 %v366_v39, %v354_v56  ;;  %v2066_v11 = vsub.s32 0, %v1233_v6  ;;  %v2068_v12 = vsub.s32 1, %v1233_v6 }
 0x156   :  { %v330_v20 = vadd.f32 %v327_v5, %v260_v14  ;;  %v331_v7 = vadd.f32 %v328_v19, %v262_v17  ;;  %v1242_v14 = vsub.s32 4, %v1233_v6  ;;  %v2070_v15 = vsub.s32 5, %v1233_v6 }
 0x157   :  { %v2072_v16 = vsub.s32 2, %v1233_v6  ;;  %v2074_v17 = vsub.s32 6, %v1233_v6  ;;  %v2076_v18 = vsub.s32 3, %v1233_v6  ;;  %v2078_v5 = vsub.s32 7, %v1233_v6 }
 0x158   :  { %v332_v1 = vadd.f32 %v331_v7, %v329_v21  ;;  %v337_v52 = vmul.f32 %v330_v20, %v122_v49  ;;  %v1235_v19 = vrot.slane %v1226_v13, %v2066_v11  ;;  %v1355_v20 = vrot.slane %v1226_v13, %v2068_v12  ;;  %v1227_v21 = vld [vmem:[#allocation9 + $0x8] sm:$0xff] }
 0x159   :  { %v1243_v7 = vrot.slane %v1226_v13, %v1242_v14  ;;  %v1359_v23 = vrot.slane %v1226_v13, %v2076_v18  ;;  %v1367_v24 = vrot.slane %v1226_v13, %v2078_v5  ;;  %v1251_v25 = vrot.slane %v1227_v21, %v2066_v11 }
 0x15a   :  { %v333_v22 = vmul.f32 %v332_v1, %v1905_v0  ;;  %v357_v0 = vld [vmem:[#allocation8 + $0x70] sm:$0xff]  ;;  %v1363_v1 = vrot.slane %v1226_v13, %v2070_v15  ;;  %v1295_v27 = vrot.slane %v1235_v19, %v2066_v11  ;;  %v1415_v28 = vrot.slane %v1355_v20, %v2068_v12 }
 0x15b   :  { %v1543_v43 = vpack.c.bf16 %v357_v0, %v345_v41  ;;  %v1371_v29 = vrot.slane %v1227_v21, %v2068_v12  ;;  %v1263_v41 = vrot.slane %v1227_v21, %v2074_v17  ;;  %v1383_v0 = vrot.slane %v1227_v21, %v2078_v5 }
 0x15c   :  { %v334_v3 = vsel %vm105_vm0, %v333_v22, 0.0  ;;  %v1239_v22 = vrot.slane %v1226_v13, %v2072_v16  ;;  %v1423_v44 = vrot.slane %v1363_v1, %v2068_v12  ;;  %v1311_v49 = vrot.slane %v1251_v25, %v2066_v11 }
 0x15d   :  { %335 = vadd.xlane.f32.xlu1 %v334_v3  ;;  %1544 = vmatpush1.bf16.msra.mxu1 %v1543_v43  ;;  %v1247_v3 = vrot.slane %v1226_v13, %v2074_v17  ;;  %v1323_v35 = vrot.slane %v1263_v41, %v2066_v11  ;;  %v1443_v36 = vrot.slane %v1383_v0, %v2068_v12 }
 0x15e   :  { %1550 = vmatprep.subr.bf16.mxu1 %v1549_v48  ;;  %v1299_v45 = vrot.slane %v1239_v22, %v2066_v11  ;;  %v1387_v61 = vrot.slane %v1228_v42, %v2068_v12  ;;  %v1395_v62 = vrot.slane %v1228_v42, %v2070_v15 }
 0x15f   :  { %v1307_v46 = vrot.slane %v1247_v3, %v2066_v11 }
 0x1ea   :  { %v336_v51 = vpop.xlane.xlu1 %335 }
 0x1eb   :  { %v338_v53 = vmul.f32 %v336_v51, %v118_v50  ;;  %v1431_v51 = vrot.slane %v1371_v29, %v2068_v12 }
 0x1ed   :  { %v339_v54 = vadd.f32 %v338_v53, %v337_v52  ;;  %v1267_v53 = vrot.slane %v1228_v42, %v2066_v11 }
 0x1ef   :  { %v340_v33 = vpack.c.bf16 %v339_v54, %v339_v54 }
 0x1f1   :  { %v341_v37 = vunpack.c.l.bf16 %v340_v33 }
 0x1f3   :  { %v342_v60 = vsub.f32 %v339_v54, %v341_v37  ;;  %v1275_v54 = vrot.slane %v1228_v42, %v1242_v14 }
 0x1f5   :  { %1525 = vmatmul.mubr.msk.f32.vlgmr.msra.gmra.mrb[0].mxu0 %vm367_vm7, %v342_v60  ;;  %1526 = vmatmul.mubr.msk.f32.vlgmr.msra.gmra.mrb[0].mxu1 %vm367_vm7, %v342_v60 }
 0x1f6   :  { %1548 = vmatpush1.bf16.msra.mxu0 %v1547_v57  ;;  %1552 = vmatpush1.bf16.msra.mxu1 %v1551_v58 }
 0x1f7   :  { %577 = vmatprep.mubr.f32.mxu0 %v1807_v30  ;;  %648 = vmatprep.mubr.f32.mxu1 %v1807_v30 }
 0x1f8   :  { %1554 = vmatprep.subr.bf16.mxu0 %v1553_v2  ;;  %1558 = vmatprep.subr.bf16.mxu1 %v1557_v8 }
 0x1f9   :  { %1527 = vmatmul.mubr.msk.f32.vlgmr.msra.gmra.mrb[2].mxu0 %vm367_vm7, %v342_v60  ;;  %1528 = vmatmul.mubr.msk.f32.vlgmr.msra.gmra.mrb[2].mxu1 %vm367_vm7, %v342_v60 }
 0x1fa   :  { %1556 = vmatpush1.bf16.msra.mxu0 %v1555_v9  ;;  %1560 = vmatpush1.bf16.msra.mxu1 %v1559_v10 }
 0x1fb   :  { %719 = vmatprep.mubr.f32.mxu0 %v1807_v30  ;;  %790 = vmatprep.mubr.f32.mxu1 %v1807_v30 }
 0x1fc   :  { %1562 = vmatprep.subr.bf16.mxu0 %v2038_v26  ;;  %1566 = vmatprep.subr.bf16.mxu1 %v1541_v31  ;;  %v1259_v26 = vrot.slane %v1227_v21, %v1242_v14  ;;  %v1255_v31 = vrot.slane %v1227_v21, %v2072_v16  ;;  %v1391_v14 = vrot.slane %v1228_v42, %v2076_v18 }
 0x1fd   :  { %1529 = vmatmul.mubr.msk.f32.vlgmr.msra.gmra.mrb[4].mxu0 %vm367_vm7, %v342_v60  ;;  %1530 = vmatmul.mubr.msk.f32.vlgmr.msra.gmra.mrb[4].mxu1 %vm367_vm7, %v342_v60 }
 0x1fe   :  { %1564 = vmatpush1.bf16.msra.mxu0 %v1539_v40  ;;  %1568 = vmatpush1.bf16.msra.mxu1 %v1543_v43  ;;  %v1375_v40 = vrot.slane %v1227_v21, %v2076_v18  ;;  %v1303_v43 = vrot.slane %v1243_v7, %v2066_v11  ;;  %v1319_v50 = vrot.slane %v1259_v26, %v2066_v11 }
 0x1ff   :  { %864 = vmatprep.mubr.f32.mxu0 %v1807_v30  ;;  %935 = vmatprep.mubr.f32.mxu1 %v1807_v30  ;;  %v1315_v55 = vrot.slane %v1255_v31, %v2066_v11  ;;  %v1447_v26 = vrot.slane %v1387_v61, %v2068_v12  ;;  %v1455_v18 = vrot.slane %v1395_v62, %v2068_v12 }
 0x200   :  { %1570 = vmatprep.subr.bf16.mxu0 %v1545_v47  ;;  %1574 = vmatprep.subr.bf16.mxu1 %v1549_v48  ;;  %v1419_v47 = vrot.slane %v1359_v23, %v2068_v12  ;;  %v1427_v48 = vrot.slane %v1367_v24, %v2068_v12  ;;  %v1435_v34 = vrot.slane %v1375_v40, %v2068_v12 }
 0x201   :  { %1531 = vmatmul.mubr.msk.f32.vlgmr.msra.gmra.mrb[0].mxu0 %vm367_vm7, %v341_v37  ;;  %1532 = vmatmul.mubr.msk.f32.vlgmr.msra.gmra.mrb[0].mxu1 %vm367_vm7, %v341_v37 }
 0x202   :  { %1572 = vmatpush1.bf16.msra.mxu0 %v1547_v57  ;;  %1576 = vmatpush1.bf16.msra.mxu1 %v1551_v58  ;;  %v1271_v57 = vrot.slane %v1228_v42, %v2072_v16  ;;  %v1279_v58 = vrot.slane %v1228_v42, %v2074_v17  ;;  %v1399_v16 = vrot.slane %v1228_v42, %v2078_v5 }
 0x203   :  { %1006 = vmatprep.mubr.f32.mxu0 %v1807_v30  ;;  %1077 = vmatprep.mubr.f32.mxu1 %v1807_v30 }
 0x204   :  { %1578 = vmatprep.subr.bf16.mxu0 %v1553_v2  ;;  %1582 = vmatprep.subr.bf16.mxu1 %v1557_v8  ;;  %v1327_v8 = vrot.slane %v1267_v53, %v2066_v11  ;;  %v1339_v7 = vrot.slane %v1279_v58, %v2066_v11 }
 0x205   :  { %1533 = vmatmul.mubr.msk.f32.vlgmr.msra.gmra.mrb[2].mxu0 %vm367_vm7, %v341_v37  ;;  %1534 = vmatmul.mubr.msk.f32.vlgmr.msra.gmra.mrb[2].mxu1 %vm367_vm7, %v341_v37 }
 0x206   :  { %1580 = vmatpush1.bf16.msra.mxu0 %v1555_v9  ;;  %1584 = vmatpush1.bf16.msra.mxu1 %v1559_v10  ;;  %v1335_v9 = vrot.slane %v1275_v54, %v2066_v11 }
 0x207   :  { %1148 = vmatprep.mubr.f32.mxu0 %v1807_v30  ;;  %1219 = vmatprep.mubr.f32.mxu1 %v1807_v30  ;;  %v1379_v30 = vrot.slane %v1227_v21, %v2070_v15  ;;  %v1331_v15 = vrot.slane %v1271_v57, %v2066_v11  ;;  %v1459_v11 = vrot.slane %v1399_v16, %v2068_v12 }
 0x209   :  { %1535 = vmatmul.mubr.msk.f32.vlgmr.msra.gmra.mrb[4].mxu0 %vm367_vm7, %v341_v37  ;;  %1536 = vmatmul.mubr.msk.f32.vlgmr.msra.gmra.mrb[4].mxu1 %vm367_vm7, %v341_v37  ;;  %v1439_v52 = vrot.slane %v1379_v30, %v2068_v12  ;;  %v1451_v30 = vrot.slane %v1391_v14, %v2068_v12 }
 0x2d4   :  { %v866_v32 = vpop.f32.mrb[0].mxu0  ;;  %v937_v33 = vpop.f32.mrb[0].mxu1 }
 0x2d5   :  { %v1340_v37 = vmul.f32 %v1295_v27, %v866_v32  ;;  %v1342_v38 = vmul.f32 %v1303_v43, %v937_v33  ;;  %v868_v56 = vpop.f32.mrb[1].mxu0  ;;  %v939_v39 = vpop.f32.mrb[1].mxu1 }
 0x2d6   :  { %v1341_v59 = vmul.f32 %v1299_v45, %v868_v56  ;;  %v1343_v60 = vmul.f32 %v1307_v46, %v939_v39 }
 0x2d7   :  { %v1460_v63 = vadd.f32 %v1415_v28, %v1340_v37  ;;  %v1462_v2 = vadd.f32 %v1423_v44, %v1342_v38 }
 0x2d8   :  { %v1461_v10 = vadd.f32 %v1419_v47, %v1341_v59  ;;  %v1463_v4 = vadd.f32 %v1427_v48, %v1343_v60  ;;  %v1008_v6 = vpop.f32.mrb[2].mxu0  ;;  %v1079_v13 = vpop.f32.mrb[2].mxu1 }
 0x2d9   :  { %v1344_v17 = vmul.f32 %v1311_v49, %v1008_v6  ;;  %v1346_v19 = vmul.f32 %v1319_v50, %v1079_v13  ;;  %v1010_v20 = vpop.f32.mrb[3].mxu0  ;;  %v1081_v21 = vpop.f32.mrb[3].mxu1 }
 0x2da   :  { %v1484_v1 = vcombine.low %v1460_v63, %v1461_v10  ;;  %v1485_v22 = vcombine.low %v1462_v2, %v1463_v4  ;;  %v1345_v3 = vmul.f32 %v1315_v55, %v1010_v20  ;;  %v1347_v23 = vmul.f32 %v1323_v35, %v1081_v21 }
 0x2db   :  { %v1464_v24 = vadd.f32 %v1431_v51, %v1344_v17  ;;  %v1466_v25 = vadd.f32 %v1439_v52, %v1346_v19 }
 0x2dc   :  { %1496 = vst [vmem:[#allocation14] sm:$0xff] %v1484_v1  ;;  %1497 = vst [vmem:[#allocation14 + $0x8] sm:$0xff] %v1485_v22  ;;  %v1465_v5 = vadd.f32 %v1435_v34, %v1345_v3  ;;  %v1467_v27 = vadd.f32 %v1443_v36, %v1347_v23  ;;  %v1150_v28 = vpop.f32.mrb[4].mxu0  ;;  %v1221_v29 = vpop.f32.mrb[4].mxu1 }
 0x2dd   :  { %v1348_v31 = vmul.f32 %v1327_v8, %v1150_v28  ;;  %v1350_v40 = vmul.f32 %v1335_v9, %v1221_v29  ;;  %v1152_v41 = vpop.f32.mrb[5].mxu0  ;;  %v1223_v0 = vpop.f32.mrb[5].mxu1 }
 0x2de   :  { %v1486_v42 = vcombine.low %v1464_v24, %v1465_v5  ;;  %v1487_v43 = vcombine.low %v1466_v25, %v1467_v27  ;;  %v1349_v44 = vmul.f32 %v1331_v15, %v1152_v41  ;;  %v1351_v45 = vmul.f32 %v1339_v7, %v1223_v0 }
 0x2df   :  { %v1468_v46 = vadd.f32 %v1447_v26, %v1348_v31  ;;  %v1470_v47 = vadd.f32 %v1455_v18, %v1350_v40 }
 0x2e0   :  { %1498 = vst [vmem:[#allocation14 + $0x10] sm:$0xff] %v1486_v42  ;;  %1499 = vst [vmem:[#allocation14 + $0x18] sm:$0xff] %v1487_v43  ;;  %v1469_v48 = vadd.f32 %v1451_v30, %v1349_v44  ;;  %v1471_v49 = vadd.f32 %v1459_v11, %v1351_v45 }
 0x2e2   :  { %v1488_v50 = vcombine.low %v1468_v46, %v1469_v48  ;;  %v1489_v51 = vcombine.low %v1470_v47, %v1471_v49 }
 0x2e4   :  { %1500 = vst [vmem:[#allocation14 + $0x20] sm:$0xff] %v1488_v50  ;;  %1501 = vst [vmem:[#allocation14 + $0x28] sm:$0xff] %v1489_v51 }
 0x2e5   :  { %1774 = shalt.err (!%p1771_p4)
}
 0x2e6   :  { %s1775_s14 = scalar_lea.hbm %s2143_s6, 768 }
 0x2e7   :  { %p1776_p5 = scmp.ne.s32.totalorder %s2143_s6, %s1775_s14  ;;  %p1779_p6 = scmp.lt.u32.totalorder %s1775_s14, %s2143_s6 }
 0x2e9   :  { %p1781_p7 = pnand %p1779_p6, %p1776_p5 }
 0x2eb   :  { %1784 = shalt.err (!%p1781_p7)
}
 0x2ec   :  { %1511 = dma.vmem_to_hbm [thread:$0]  %s1509_s10, 768, %s2143_s6, [#allocation4]  }
 0x2ed   :  { %1795 = dma.done.wait [#allocation4], 768  }
 0x2ee   :  { %1796 = vsyncadd [#allocation4], 4294966528 }
 0x2ef   :  { %1515 = vsyncpa [#allocation3], 1 }
 0x2f0   :  { %1516 = vsyncpa [#allocation7], 1 }
 0x2f1   :  { %1517 = vsyncpa [#allocation10], 1 }
 0x2f2   :  { %1518 = vsyncpa [#allocation4], 1 }
 0x2f3   :  { %1519 = vsyncpa [#allocation5], 1 }
 0x2f4   :  { %1520 = vsyncpa [#allocation13], 1 }

</bundles_post_ra>
